<compile_context>
chip_gen: v7x
topology: tpu7x:2x2x1
jax: 0.10.0
libtpu: 0.0.40
codegen_flags: <defaults>
</compile_context>

<pallas_src>
import functools

import jax
import jax.numpy as jnp
from jax.experimental import pallas as pl
from jax.experimental.pallas import tpu as pltpu

# Logical (PyTorch) dims and lane-padded dims for the *weights* only.
D_IN, H1, H2, NUM_CLASSES = 784, 120, 84, 10
H1_P, H2_P, CLS_P = 128, 128, 128


def _cdiv(a, b):
    return -(-a // b)


def _round_up(n, m):
    return ((n + m - 1) // m) * m


def _pad_to(arr, shape):
    pads = [(0, t - s) for s, t in zip(arr.shape, shape)]
    return jnp.pad(arr, pads)


def mlp_logsoftmax_kernel(x_ref, w1_ref, b1_ref, w2_ref, b2_ref,
                          w3_ref, b3_ref, o_ref):
    # Cast the f32 x tile to bf16 in-register (VPU work, hidden under the x DMA).
    x_bf = x_ref[...].astype(jnp.bfloat16)

    # fc1 + relu  (bf16 MXU operands, f32 accumulation / elementwise)
    h1 = jnp.dot(x_bf, w1_ref[...], preferred_element_type=jnp.float32)
    h1 = jnp.maximum(h1 + b1_ref[...], 0.0)
    # fc2 + relu
    h2 = jnp.dot(h1.astype(jnp.bfloat16), w2_ref[...],
                 preferred_element_type=jnp.float32)
    h2 = jnp.maximum(h2 + b2_ref[...], 0.0)
    # fc3
    logits = jnp.dot(h2.astype(jnp.bfloat16), w3_ref[...],
                     preferred_element_type=jnp.float32)
    logits = logits + b3_ref[...]

    # Mask the padded class lanes (cols >= NUM_CLASSES) so the log_softmax
    # normalizes only over the 10 real classes.
    col = jax.lax.broadcasted_iota(jnp.int32, logits.shape, 1)
    logits = jnp.where(col < NUM_CLASSES, logits, jnp.float32(-1e30))

    # Numerically-stable log_softmax over dim=1, fully in f32.
    m = jnp.max(logits, axis=1, keepdims=True)
    shifted = logits - m
    lse = jnp.log(jnp.sum(jnp.exp(shifted), axis=1, keepdims=True))

    # Store only the 10 real class lanes (lane-dense masked store).
    o_ref[...] = (shifted - lse)[:, :NUM_CLASSES]


def net_forward(x, params, *, tile_n=2048):
    """x: (N, 784) f32. params: (w1,b1,w2,b2,w3,b3) with weights as (in, out)."""
    w1, b1, w2, b2, w3, b3 = params
    N = x.shape[0]

    # Tiny batches: pad up to a single minimal 16-row tile (rare, cheap).
    N_run = N
    if N < 16:
        x = jnp.pad(x, ((0, 16 - N), (0, 0)))
        N_run = 16

    # Batch tile: multiple of 16 (bf16 sublane packing), and small enough that
    # the grid has >= ~8 steps for large N (keeps both v7x TCs busy).
    tile_n = max(16, min(tile_n, _round_up(_cdiv(N_run, 8), 16)))
    grid_n = _cdiv(N_run, tile_n)

    # Pad + cast the (small) weights once at the wrapper boundary; biases f32.
    w1_p = _pad_to(w1, (D_IN, H1_P)).astype(jnp.bfloat16)
    b1_p = _pad_to(b1, (1, H1_P)).astype(jnp.float32)
    w2_p = _pad_to(w2, (H1_P, H2_P)).astype(jnp.bfloat16)
    b2_p = _pad_to(b2, (1, H2_P)).astype(jnp.float32)
    w3_p = _pad_to(w3, (H2_P, CLS_P)).astype(jnp.bfloat16)
    b3_p = _pad_to(b3, (1, CLS_P)).astype(jnp.float32)

    const = lambda i: (0, 0)  # weights/biases stay resident across the grid
    out = pl.pallas_call(
        mlp_logsoftmax_kernel,
        out_shape=jax.ShapeDtypeStruct((N_run, NUM_CLASSES), jnp.float32),
        grid=(grid_n,),
        in_specs=[
            pl.BlockSpec((tile_n, D_IN), lambda i: (i, 0)),  # x tile (f32, unpadded)
            pl.BlockSpec((D_IN, H1_P), const),               # w1
            pl.BlockSpec((1, H1_P), const),                  # b1
            pl.BlockSpec((H1_P, H2_P), const),               # w2
            pl.BlockSpec((1, H2_P), const),                  # b2
            pl.BlockSpec((H2_P, CLS_P), const),              # w3
            pl.BlockSpec((1, CLS_P), const),                 # b3
        ],
        out_specs=pl.BlockSpec((tile_n, NUM_CLASSES), lambda i: (i, 0)),
        compiler_params=pltpu.CompilerParams(
            dimension_semantics=("parallel",),
            vmem_limit_bytes=32 * 1024 * 1024,
        ),
    )(x, w1_p, b1_p, w2_p, b2_p, w3_p, b3_p)

    return out[:N] if N_run != N else out


def net_forward_ref(x, params):
    """Pure-JAX f32 reference matching the PyTorch forward."""
    w1, b1, w2, b2, w3, b3 = params
    h1 = jnp.maximum(x @ w1 + b1, 0.0)
    h2 = jnp.maximum(h1 @ w2 + b2, 0.0)
    logits = h2 @ w3 + b3
    return jax.nn.log_softmax(logits, axis=1)


def init_params(key):
    # Deterministic init mimicking PyTorch Linear (uniform in +/- 1/sqrt(fan_in)).
    # Weights stored as (in, out) so the kernel does x @ W directly.
    dims = [(D_IN, H1), (H1, H2), (H2, NUM_CLASSES)]
    params = []
    for fan_in, fan_out in dims:
        kw, kb, key = jax.random.split(key, 3)
        bound = 1.0 / (fan_in ** 0.5)
        w = jax.random.uniform(kw, (fan_in, fan_out), jnp.float32, -bound, bound)
        b = jax.random.uniform(kb, (1, fan_out), jnp.float32, -bound, bound)
        params.extend([w, b])
    return params


if __name__ == "__main__":
    key = jax.random.PRNGKey(0)
    kx, kp = jax.random.split(key)
    params = init_params(kp)

    # Case 1: single-tile batch.
    N = 16
    x = jax.random.normal(kx, (N, D_IN), jnp.float32)
    fwd = jax.jit(functools.partial(net_forward))
    out = fwd(x, params)
    jax.block_until_ready(out)
    assert out.shape == (N, NUM_CLASSES)
    assert jnp.allclose(jnp.sum(jnp.exp(out), axis=1), 1.0, atol=1e-4)
    ref = net_forward_ref(x, params)
    assert jnp.allclose(out, ref, atol=5e-2), jnp.max(jnp.abs(out - ref))

    # Case 2: multi-tile batch with a partial last block (masked stores path).
    N2 = 200
    x2 = jax.random.normal(jax.random.PRNGKey(1), (N2, D_IN), jnp.float32)
    out2 = jax.jit(functools.partial(net_forward, tile_n=64))(x2, params)
    jax.block_until_ready(out2)
    assert out2.shape == (N2, NUM_CLASSES)
    assert jnp.allclose(jnp.sum(jnp.exp(out2), axis=1), 1.0, atol=1e-4)
    ref2 = net_forward_ref(x2, params)
    assert jnp.allclose(out2, ref2, atol=5e-2), jnp.max(jnp.abs(out2 - ref2))

    # Case 3: larger batch, default tiling (multi-step parallel grid).
    N3 = 1024
    x3 = jax.random.normal(jax.random.PRNGKey(2), (N3, D_IN), jnp.float32)
    out3 = fwd(x3, params)
    jax.block_until_ready(out3)
    assert out3.shape == (N3, NUM_CLASSES)
    assert jnp.allclose(jnp.sum(jnp.exp(out3), axis=1), 1.0, atol=1e-4)
    ref3 = net_forward_ref(x3, params)
    assert jnp.allclose(out3, ref3, atol=5e-2), jnp.max(jnp.abs(out3 - ref3))

    print("KERNEL_OK")
</pallas_src>

<mosaic_0001>
module attributes {stable_mosaic.version = 11 : i64} {
  func.func @mlp_logsoftmax_kernel(%arg0: i32, %arg1: memref<16x784xf32, #tpu.memory_space<vmem>>, %arg2: memref<784x128xbf16, #tpu.memory_space<vmem>>, %arg3: memref<1x128xf32, #tpu.memory_space<vmem>>, %arg4: memref<128x128xbf16, #tpu.memory_space<vmem>>, %arg5: memref<1x128xf32, #tpu.memory_space<vmem>>, %arg6: memref<128x128xbf16, #tpu.memory_space<vmem>>, %arg7: memref<1x128xf32, #tpu.memory_space<vmem>>, %arg8: memref<16x10xf32, #tpu.memory_space<vmem>>) attributes {dimension_semantics = [#tpu.dimension_semantics<parallel>], iteration_bounds = array<i64: 1>, scalar_prefetch = 0 : i64, scratch_operands = 0 : i64, tpu.core_type = #tpu.core_type<tc>, window_params = [{transform_indices = @transform_0, window_bounds = array<i64: 16, 784>}, {pipeline_mode = #tpu.pipeline_mode<synchronous>, transform_indices = @transform_1, window_bounds = array<i64: 784, 128>}, {pipeline_mode = #tpu.pipeline_mode<synchronous>, transform_indices = @transform_2, window_bounds = array<i64: 1, 128>}, {pipeline_mode = #tpu.pipeline_mode<synchronous>, transform_indices = @transform_3, window_bounds = array<i64: 128, 128>}, {pipeline_mode = #tpu.pipeline_mode<synchronous>, transform_indices = @transform_4, window_bounds = array<i64: 1, 128>}, {pipeline_mode = #tpu.pipeline_mode<synchronous>, transform_indices = @transform_5, window_bounds = array<i64: 128, 128>}, {pipeline_mode = #tpu.pipeline_mode<synchronous>, transform_indices = @transform_6, window_bounds = array<i64: 1, 128>}, {transform_indices = @transform_7, window_bounds = array<i64: 16, 10>}]} {
    %c0 = arith.constant 0 : index
    %c0_0 = arith.constant 0 : index
    %0 = vector.load %arg1[%c0, %c0_0] : memref<16x784xf32, #tpu.memory_space<vmem>>, vector<16x784xf32>
    %1 = arith.truncf %0 : vector<16x784xf32> to vector<16x784xbf16>
    %c0_1 = arith.constant 0 : index
    %c0_2 = arith.constant 0 : index
    %2 = vector.load %arg2[%c0_1, %c0_2] : memref<784x128xbf16, #tpu.memory_space<vmem>>, vector<784x128xbf16>
    %cst = arith.constant dense<0.000000e+00> : vector<16x128xf32>
    %3 = tpu.matmul %1, %2, %cst {dimension_numbers = #tpu.dot_dimension_numbers<[1], [0], [0], [1], [0, 0, 1, 1], [], []>} : vector<16x784xbf16>, vector<784x128xbf16>, vector<16x128xf32> -> vector<16x128xf32>
    %c0_3 = arith.constant 0 : index
    %c0_4 = arith.constant 0 : index
    %4 = vector.load %arg3[%c0_3, %c0_4] : memref<1x128xf32, #tpu.memory_space<vmem>>, vector<1x128xf32>
    %5 = vector.broadcast %4 : vector<1x128xf32> to vector<16x128xf32>
    %6 = arith.addf %3, %5 : vector<16x128xf32>
    %cst_5 = arith.constant 0.000000e+00 : f32
    %7 = vector.broadcast %cst_5 : f32 to vector<16x128xf32>
    %8 = arith.maximumf %6, %7 : vector<16x128xf32>
    %9 = arith.truncf %8 : vector<16x128xf32> to vector<16x128xbf16>
    %c0_6 = arith.constant 0 : index
    %c0_7 = arith.constant 0 : index
    %10 = vector.load %arg4[%c0_6, %c0_7] : memref<128x128xbf16, #tpu.memory_space<vmem>>, vector<128x128xbf16>
    %cst_8 = arith.constant dense<0.000000e+00> : vector<16x128xf32>
    %11 = tpu.matmul %9, %10, %cst_8 {dimension_numbers = #tpu.dot_dimension_numbers<[1], [0], [0], [1], [0, 0, 1, 1], [], []>} : vector<16x128xbf16>, vector<128x128xbf16>, vector<16x128xf32> -> vector<16x128xf32>
    %c0_9 = arith.constant 0 : index
    %c0_10 = arith.constant 0 : index
    %12 = vector.load %arg5[%c0_9, %c0_10] : memref<1x128xf32, #tpu.memory_space<vmem>>, vector<1x128xf32>
    %13 = vector.broadcast %12 : vector<1x128xf32> to vector<16x128xf32>
    %14 = arith.addf %11, %13 : vector<16x128xf32>
    %cst_11 = arith.constant 0.000000e+00 : f32
    %15 = vector.broadcast %cst_11 : f32 to vector<16x128xf32>
    %16 = arith.maximumf %14, %15 : vector<16x128xf32>
    %17 = arith.truncf %16 : vector<16x128xf32> to vector<16x128xbf16>
    %c0_12 = arith.constant 0 : index
    %c0_13 = arith.constant 0 : index
    %18 = vector.load %arg6[%c0_12, %c0_13] : memref<128x128xbf16, #tpu.memory_space<vmem>>, vector<128x128xbf16>
    %cst_14 = arith.constant dense<0.000000e+00> : vector<16x128xf32>
    %19 = tpu.matmul %17, %18, %cst_14 {dimension_numbers = #tpu.dot_dimension_numbers<[1], [0], [0], [1], [0, 0, 1, 1], [], []>} : vector<16x128xbf16>, vector<128x128xbf16>, vector<16x128xf32> -> vector<16x128xf32>
    %c0_15 = arith.constant 0 : index
    %c0_16 = arith.constant 0 : index
    %20 = vector.load %arg7[%c0_15, %c0_16] : memref<1x128xf32, #tpu.memory_space<vmem>>, vector<1x128xf32>
    %21 = vector.broadcast %20 : vector<1x128xf32> to vector<16x128xf32>
    %22 = arith.addf %19, %21 : vector<16x128xf32>
    %23 = tpu.iota {dimensions = array<i32: 1>} : vector<16x128xi32>
    %c10_i32 = arith.constant 10 : i32
    %24 = vector.broadcast %c10_i32 : i32 to vector<16x128xi32>
    %25 = arith.cmpi slt, %23, %24 : vector<16x128xi32>
    %cst_17 = arith.constant -1.000000e+30 : f32
    %26 = vector.broadcast %cst_17 : f32 to vector<16x128xf32>
    %27 = arith.select %25, %22, %26 : vector<16x128xi1>, vector<16x128xf32>
    %cst_18 = arith.constant dense<0xFF800000> : vector<16xf32>
    %28 = vector.multi_reduction <maximumf>, %27, %cst_18 [1] : vector<16x128xf32> to vector<16xf32>
    %29 = vector.shape_cast %28 : vector<16xf32> to vector<16x1xf32>
    %30 = vector.broadcast %29 : vector<16x1xf32> to vector<16x128xf32>
    %31 = arith.subf %27, %30 : vector<16x128xf32>
    %32 = math.exp %31 : vector<16x128xf32>
    %cst_19 = arith.constant dense<0.000000e+00> : vector<16xf32>
    %33 = vector.multi_reduction <add>, %32, %cst_19 [1] : vector<16x128xf32> to vector<16xf32>
    %34 = vector.shape_cast %33 : vector<16xf32> to vector<16x1xf32>
    %35 = math.log %34 : vector<16x1xf32>
    %36 = vector.broadcast %35 : vector<16x1xf32> to vector<16x128xf32>
    %37 = arith.subf %31, %36 : vector<16x128xf32>
    %38 = vector.extract_strided_slice %37 {offsets = [0, 0], sizes = [16, 10], strides = [1, 1]} : vector<16x128xf32> to vector<16x10xf32>
    %c0_20 = arith.constant 0 : index
    %c0_21 = arith.constant 0 : index
    %39 = vector.load %arg8[%c0_20, %c0_21] : memref<16x10xf32, #tpu.memory_space<vmem>>, vector<16x10xf32>
    tpu.vector_store %arg8[%c0_20, %c0_21], %38 {strides = array<i32>} : memref<16x10xf32, #tpu.memory_space<vmem>>, vector<16x10xf32>,
    return
  }
  func.func @transform_0(%arg0: i32) -> (i32, i32) {
    %c0_i32 = arith.constant 0 : i32
    %c0_i32_0 = arith.constant 0 : i32
    return %arg0, %c0_i32 : i32, i32
  }
  func.func @transform_1(%arg0: i32) -> (i32, i32) {
    %c0_i32 = arith.constant 0 : i32
    %c0_i32_0 = arith.constant 0 : i32
    %c0_i32_1 = arith.constant 0 : i32
    return %c0_i32, %c0_i32_0 : i32, i32
  }
  func.func @transform_2(%arg0: i32) -> (i32, i32) {
    %c0_i32 = arith.constant 0 : i32
    %c0_i32_0 = arith.constant 0 : i32
    %c0_i32_1 = arith.constant 0 : i32
    return %c0_i32, %c0_i32_0 : i32, i32
  }
  func.func @transform_3(%arg0: i32) -> (i32, i32) {
    %c0_i32 = arith.constant 0 : i32
    %c0_i32_0 = arith.constant 0 : i32
    %c0_i32_1 = arith.constant 0 : i32
    return %c0_i32, %c0_i32_0 : i32, i32
  }
  func.func @transform_4(%arg0: i32) -> (i32, i32) {
    %c0_i32 = arith.constant 0 : i32
    %c0_i32_0 = arith.constant 0 : i32
    %c0_i32_1 = arith.constant 0 : i32
    return %c0_i32, %c0_i32_0 : i32, i32
  }
  func.func @transform_5(%arg0: i32) -> (i32, i32) {
    %c0_i32 = arith.constant 0 : i32
    %c0_i32_0 = arith.constant 0 : i32
    %c0_i32_1 = arith.constant 0 : i32
    return %c0_i32, %c0_i32_0 : i32, i32
  }
  func.func @transform_6(%arg0: i32) -> (i32, i32) {
    %c0_i32 = arith.constant 0 : i32
    %c0_i32_0 = arith.constant 0 : i32
    %c0_i32_1 = arith.constant 0 : i32
    return %c0_i32, %c0_i32_0 : i32, i32
  }
  func.func @transform_7(%arg0: i32) -> (i32, i32) {
    %c0_i32 = arith.constant 0 : i32
    %c0_i32_0 = arith.constant 0 : i32
    return %arg0, %c0_i32 : i32, i32
  }
}

</mosaic_0001>

<bundles_post_ra>
// kernel: net_forward.1
= control target key start
LH: loop header
LB: loop body
LE: loop exit
PB: predicated region body
PF: predicated region fallthrough
CT: control target
= control target key end

     0   :  { %v1193_v43 = vmov 0.0   ;;  %vm1194_vm0 = vmmov 0   ;;  %vm448_vm1 = vcmask 130048   ;;  %s1519_s0 = inlined_call_operand.vmem [shape: f32[16,784], index: 0, kind: input, shape index: {}]   ;;  %s1520_s1 = inlined_call_operand.vmem [shape: bf16[784,128], index: 1, kind: input, shape index: {}]   ;;  %s1521_s2 = inlined_call_operand.vmem [shape: f32[1,128], index: 2, kind: input, shape index: {}]   ;;  %s1522_s3 = inlined_call_operand.vmem [shape: bf16[128,128], index: 3, kind: input, shape index: {}]   ;;  %s1523_s4 = inlined_call_operand.vmem [shape: f32[1,128], index: 4, kind: input, shape index: {}]   ;;  %s1524_s5 = inlined_call_operand.vmem [shape: bf16[128,128], index: 5, kind: input, shape index: {}]   ;;  %s1525_s6 = inlined_call_operand.vmem [shape: f32[1,128], index: 6, kind: input, shape index: {}]   ;;  %s1526_s7 = inlined_call_operand.hbm [shape: f32[16,10], index: 7, kind: output, shape index: {}]  }
   0x1   :  { %v1096_v0 = vld [vmem:[%s1520_s1 + $0x40] sm:$0xff]   ;;  %v1100_v4 = vld [vmem:[%s1520_s1 + $0x48] sm:$0xff]   ;;  %v1104_v8 = vld [vmem:[%s1520_s1 + $0x50] sm:$0xff]  }
   0x2   :  { %v1097_v1 = vld [vmem:[%s1520_s1] sm:$0xff]   ;;  %959 = vmatprep.subr.bf16.mxu0 %v1096_v0  ;;  %v1101_v5 = vld [vmem:[%s1520_s1 + $0x8] sm:$0xff]   ;;  %v1105_v9 = vld [vmem:[%s1520_s1 + $0x10] sm:$0xff]  }
   0x3   :  { %v1098_v2 = vld [vmem:[%s1520_s1 + $0xc0] sm:$0xff]   ;;  %960 = vmatpush3.bf16.msra.mxu0 %v1097_v1  ;;  %v1102_v6 = vld [vmem:[%s1520_s1 + $0xc8] sm:$0xff]   ;;  %v1106_v10 = vld [vmem:[%s1520_s1 + $0xd0] sm:$0xff]  }
   0x4   :  { %v1099_v3 = vld [vmem:[%s1520_s1 + $0x80] sm:$0xff]   ;;  %981 = vmatprep.subr.bf16.mxu1 %v1098_v2  ;;  %961 = vmatprep.subr.bf16.mxu0 %v1100_v4  ;;  %v1103_v7 = vld [vmem:[%s1520_s1 + $0x88] sm:$0xff]   ;;  %v1107_v11 = vld [vmem:[%s1520_s1 + $0x90] sm:$0xff]  }
   0x5   :  { %982 = vmatpush3.bf16.msra.mxu1 %v1099_v3  ;;  %v1108_v12 = vld [vmem:[%s1520_s1 + $0x58] sm:$0xff]   ;;  %v1112_v16 = vld [vmem:[%s1520_s1 + $0x60] sm:$0xff]   ;;  %v1116_v20 = vld [vmem:[%s1520_s1 + $0x68] sm:$0xff]  }
   0x6   :  { %983 = vmatprep.subr.bf16.mxu1 %v1102_v6  ;;  %v1109_v13 = vld [vmem:[%s1520_s1 + $0x18] sm:$0xff]   ;;  %v1113_v17 = vld [vmem:[%s1520_s1 + $0x20] sm:$0xff]   ;;  %v1117_v21 = vld [vmem:[%s1520_s1 + $0x28] sm:$0xff]  }
   0x7   :  { %962 = vmatpush3.bf16.msra.mxu0 %v1101_v5  ;;  %v1110_v14 = vld [vmem:[%s1520_s1 + $0xd8] sm:$0xff]   ;;  %v1114_v18 = vld [vmem:[%s1520_s1 + $0xe0] sm:$0xff]   ;;  %v1118_v22 = vld [vmem:[%s1520_s1 + $0xe8] sm:$0xff]  }
   0x8   :  { %963 = vmatprep.subr.bf16.mxu0 %v1104_v8  ;;  %v1111_v15 = vld [vmem:[%s1520_s1 + $0x98] sm:$0xff]   ;;  %v1115_v19 = vld [vmem:[%s1520_s1 + $0xa0] sm:$0xff]   ;;  %v1119_v23 = vld [vmem:[%s1520_s1 + $0xa8] sm:$0xff]  }
   0x9   :  { %984 = vmatpush3.bf16.msra.mxu1 %v1103_v7  ;;  %v1120_v24 = vld [vmem:[%s1520_s1 + $0x70] sm:$0xff]   ;;  %v1124_v28 = vld [vmem:[%s1520_s1 + $0x78] sm:$0xff]   ;;  %v29_v31 = vld [vmem:[%s1519_s0 + $0x8] sm:$0xff] }
   0xa   :  { %985 = vmatprep.subr.bf16.mxu1 %v1106_v10  ;;  %v1121_v25 = vld [vmem:[%s1520_s1 + $0x30] sm:$0xff]   ;;  %v1125_v29 = vld [vmem:[%s1520_s1 + $0x38] sm:$0xff]   ;;  %v36_v32 = vld [vmem:[%s1519_s0 + $0x40] sm:$0xff] }
   0xb   :  { %964 = vmatpush3.bf16.msra.mxu0 %v1105_v9  ;;  %v1122_v26 = vld [vmem:[%s1520_s1 + $0xf0] sm:$0xff]   ;;  %v1126_v30 = vld [vmem:[%s1520_s1 + $0xf8] sm:$0xff]   ;;  %v43_v33 = vpack.c.bf16 %v36_v32, %v29_v31  ;;  %v28_v35 = vld [vmem:[%s1519_s0] sm:$0xff] }
   0xc   :  { %965 = vmatprep.subr.bf16.mxu0 %v1108_v12  ;;  %v1123_v27 = vld [vmem:[%s1520_s1 + $0xb0] sm:$0xff]   ;;  %v1127_v34 = vld [vmem:[%s1520_s1 + $0xb8] sm:$0xff]   ;;  %v1128_v38 = vld [vmem:[%s1520_s1 + $0x140] sm:$0xff]  }
   0xd   :  { %986 = vmatpush3.bf16.msra.mxu1 %v1107_v11  ;;  %v35_v36 = vld [vmem:[%s1519_s0 + $0x38] sm:$0xff]  ;;  %484 = vmatprep.mubr.bf16.mxu0 %v43_v33  ;;  %v38_v40 = vld [vmem:[%s1519_s0 + $0x50] sm:$0xff]  ;;  %v1129_v42 = vld [vmem:[%s1520_s1 + $0x100] sm:$0xff]  }
   0xe   :  { %987 = vmatprep.subr.bf16.mxu1 %v1110_v14  ;;  %v42_v37 = vpack.c.bf16 %v35_v36, %v28_v35  ;;  %v31_v39 = vld [vmem:[%s1519_s0 + $0x18] sm:$0xff]  ;;  %v30_v44 = vld [vmem:[%s1519_s0 + $0x10] sm:$0xff]  ;;  %v37_v45 = vld [vmem:[%s1519_s0 + $0x48] sm:$0xff] }
   0xf   :  { %966 = vmatpush3.bf16.msra.mxu0 %v1109_v13  ;;  %v45_v41 = vpack.c.bf16 %v38_v40, %v31_v39  ;;  %v44_v46 = vpack.c.bf16 %v37_v45, %v30_v44  ;;  %v1130_v47 = vld [vmem:[%s1520_s1 + $0x148] sm:$0xff]   ;;  %v1132_v49 = vld [vmem:[%s1520_s1 + $0x150] sm:$0xff]   ;;  %v1134_v51 = vld [vmem:[%s1520_s1 + $0x158] sm:$0xff]  }
  0x10   :  { %967 = vmatprep.subr.bf16.mxu0 %v1112_v16  ;;  %v1131_v48 = vld [vmem:[%s1520_s1 + $0x108] sm:$0xff]   ;;  %v1133_v50 = vld [vmem:[%s1520_s1 + $0x110] sm:$0xff]   ;;  %v1135_v52 = vld [vmem:[%s1520_s1 + $0x118] sm:$0xff]  }
  0x11   :  { %988 = vmatpush3.bf16.msra.mxu1 %v1111_v15  ;;  %525 = vmatprep.mubr.bf16.mxu1 %v45_v41  ;;  %v1136_v53 = vld [vmem:[%s1520_s1 + $0x160] sm:$0xff]   ;;  %v1138_v55 = vld [vmem:[%s1520_s1 + $0x168] sm:$0xff]   ;;  %v1140_v59 = vld [vmem:[%s1520_s1 + $0x170] sm:$0xff]  }
  0x12   :  { %989 = vmatprep.subr.bf16.mxu1 %v1114_v18  ;;  %v1137_v54 = vld [vmem:[%s1520_s1 + $0x120] sm:$0xff]   ;;  %v33_v57 = vld [vmem:[%s1519_s0 + $0x28] sm:$0xff]  ;;  %v34_v62 = vld [vmem:[%s1519_s0 + $0x30] sm:$0xff] }
  0x13   :  { %968 = vmatpush3.bf16.msra.mxu0 %v1113_v17  ;;  %v1144_v56 = vld [vmem:[%s1520_s1 + $0x180] sm:$0xff]   ;;  %v1139_v58 = vld [vmem:[%s1520_s1 + $0x128] sm:$0xff]   ;;  %v1141_v1 = vld [vmem:[%s1520_s1 + $0x130] sm:$0xff]  }
  0x14   :  { %969 = vmatprep.subr.bf16.mxu0 %v1116_v20  ;;  %v40_v60 = vld [vmem:[%s1519_s0 + $0x60] sm:$0xff]  ;;  %v41_v63 = vld [vmem:[%s1519_s0 + $0x68] sm:$0xff]  ;;  %v1142_v2 = vld [vmem:[%s1520_s1 + $0x178] sm:$0xff]  }
  0x15   :  { %990 = vmatpush3.bf16.msra.mxu1 %v1115_v19  ;;  %v47_v61 = vpack.c.bf16 %v40_v60, %v33_v57  ;;  %v48_v0 = vpack.c.bf16 %v41_v63, %v34_v62  ;;  %v1143_v3 = vld [vmem:[%s1520_s1 + $0x138] sm:$0xff]   ;;  %v32_v4 = vld [vmem:[%s1519_s0 + $0x20] sm:$0xff] }
  0x16   :  { %991 = vmatprep.subr.bf16.mxu1 %v1118_v22  ;;  %v39_v5 = vld [vmem:[%s1519_s0 + $0x58] sm:$0xff] }
  0x17   :  { %970 = vmatpush3.bf16.msra.mxu0 %v1117_v21  ;;  %v46_v6 = vpack.c.bf16 %v39_v5, %v32_v4 }
  0x18   :  { %971 = vmatprep.subr.bf16.mxu0 %v1120_v24 }
  0x19   :  { %992 = vmatpush3.bf16.msra.mxu1 %v1119_v23 }
  0x1a   :  { %993 = vmatprep.subr.bf16.mxu1 %v1122_v26 }
  0x1b   :  { %972 = vmatpush3.bf16.msra.mxu0 %v1121_v25 }
  0x1c   :  { %973 = vmatprep.subr.bf16.mxu0 %v1124_v28 }
  0x1d   :  { %994 = vmatpush3.bf16.msra.mxu1 %v1123_v27 }
  0x1e   :  { %995 = vmatprep.subr.bf16.mxu1 %v1126_v30 }
  0x1f   :  { %974 = vmatpush3.bf16.msra.mxu0 %v1125_v29 }
  0x20   :  { %1003 = vmatprep.subr.bf16.mxu0 %v1128_v38 }
  0x21   :  { %996 = vmatpush3.bf16.msra.mxu1 %v1127_v34 }
  0x22   :  { %1045 = vmatprep.subr.bf16.mxu1 %v1193_v43  ;;  %485 = vmatmul.mubr.bf16.vlgmr.msra.gmra.mrb[0].mxu0 %v42_v37 }
  0x23   :  { %1004 = vmatpush3.bf16.msra.mxu0 %v1129_v42  ;;  %566 = vmatprep.mubr.bf16.mxu0 %v47_v61 }
  0x24   :  { %526 = vmatmul.mubr.bf16.vlgmr.msra.gmra.mrb[0].mxu1 %v44_v46  ;;  %1005 = vmatprep.subr.bf16.mxu0 %v1130_v47 }
  0x25   :  { %1047 = vmatprep.mubr.msk.bf16.mxu1 %vm1194_vm0, %v1193_v43  ;;  %1046 = vmatpush3.bf16.msra.mxu1 %v1144_v56 }
  0x26   :  { %1051 = vmatprep.subr.bf16.mxu1 %v1193_v43 }
  0x27   :  { %1006 = vmatpush3.bf16.msra.mxu0 %v1131_v48 }
  0x28   :  { %1007 = vmatprep.subr.bf16.mxu0 %v1132_v49 }
  0x2b   :  { %1008 = vmatpush3.bf16.msra.mxu0 %v1133_v50 }
  0x2c   :  { %1009 = vmatprep.subr.bf16.mxu0 %v1134_v51  ;;  %1048 = vmatmul.mubr.msk.bf16.vlgmr.msra.gmra.mrb[4].mxu1 %vm448_vm1, %v48_v0 }
  0x2d   :  { %1067 = vmatprep.mubr.msk.bf16.mxu1 %vm1194_vm0, %v1193_v43 }
  0x2f   :  { %1010 = vmatpush3.bf16.msra.mxu0 %v1135_v52 }
  0x30   :  { %1011 = vmatprep.subr.bf16.mxu0 %v1136_v53 }
  0x33   :  { %1012 = vmatpush3.bf16.msra.mxu0 %v1137_v54 }
  0x34   :  { %1013 = vmatprep.subr.bf16.mxu0 %v1138_v55 }
  0x37   :  { %1014 = vmatpush3.bf16.msra.mxu0 %v1139_v58 }
  0x38   :  { %1015 = vmatprep.subr.bf16.mxu0 %v1140_v59 }
  0x3b   :  { %1016 = vmatpush3.bf16.msra.mxu0 %v1141_v1 }
  0x3c   :  { %1017 = vmatprep.subr.bf16.mxu0 %v1142_v2 }
  0x3d   :  { %12 = vsyncpa [#allocation3], 0  ;;  %v1145_v7 = vld [vmem:[%s1522_s3] sm:$0xff]   ;;  %v1146_v8 = vld [vmem:[%s1522_s3 + $0x8] sm:$0xff]   ;;  %vm871_vm3 = vcmask 80896  }
  0x3e   :  { %1052 = vmatpush3.bf16.msra.mxu1 %v1145_v7  ;;  %v1147_v9 = vld [vmem:[%s1522_s3 + $0x10] sm:$0xff]   ;;  %v1148_v10 = vld [vmem:[%s1522_s3 + $0x18] sm:$0xff]   ;;  %v1149_v11 = vld [vmem:[%s1522_s3 + $0x20] sm:$0xff]  }
  0x3f   :  { %1018 = vmatpush3.bf16.msra.mxu0 %v1143_v3  ;;  %1053 = vmatprep.subr.bf16.mxu1 %v1193_v43  ;;  %v1150_v12 = vld [vmem:[%s1522_s3 + $0x28] sm:$0xff]   ;;  %v1151_v13 = vld [vmem:[%s1522_s3 + $0x30] sm:$0xff]   ;;  %v1152_v14 = vld [vmem:[%s1522_s3 + $0x38] sm:$0xff]  }
  0x40   :  { %1071 = vmatprep.subr.bf16.mxu0 %v1193_v43  ;;  %v1153_v15 = vld [vmem:[%s1524_s5] sm:$0xff]   ;;  %v1154_v16 = vld [vmem:[%s1524_s5 + $0x8] sm:$0xff]   ;;  %v1155_v17 = vld [vmem:[%s1524_s5 + $0x10] sm:$0xff]  }
  0x41   :  { %v1156_v18 = vld [vmem:[%s1524_s5 + $0x18] sm:$0xff]   ;;  %v1157_v19 = vld [vmem:[%s1524_s5 + $0x20] sm:$0xff]   ;;  %v1158_v20 = vld [vmem:[%s1524_s5 + $0x28] sm:$0xff]  }
  0x42   :  { %567 = vmatmul.mubr.bf16.vlgmr.msra.gmra.mrb[4].mxu0 %v46_v6  ;;  %1054 = vmatpush3.bf16.msra.mxu1 %v1146_v8  ;;  %v890_v22 = vld [vmem:[%s1521_s2] ss:$0 sm:$0xff]  ;;  %v1159_v56 = vld [vmem:[%s1524_s5 + $0x30] sm:$0xff]   ;;  %v1160_v57 = vld [vmem:[%s1524_s5 + $0x38] sm:$0xff]  }
  0x43   :  { %1087 = vmatprep.mubr.msk.bf16.mxu0 %vm1194_vm0, %v1193_v43  ;;  %1055 = vmatprep.subr.bf16.mxu1 %v1193_v43  ;;  %v941_v58 = vld [vmem:[%s1523_s4] ss:$0 sm:$0xff]  ;;  %s1195_s4 = smov [#allocation2]  }
  0x44   :  { %1072 = vmatpush3.bf16.msra.mxu0 %v1153_v15  ;;  %v950_v5 = vld [vmem:[%s1525_s6] ss:$0 sm:$0xff]  ;;  %s879_s5 = sshll.u32 %s1195_s4, 4  ;;  %s880_s5 = int_to_ptr.vmem [resolvable:$true] %s879_s5 }
  0x45   :  { %1073 = vmatprep.subr.bf16.mxu0 %v1193_v43  ;;  %s1169_s6 = scalar_lea.vmem %s880_s5, 256  ;;  %p1174_p1 = scmp.lt.s32.totalorder %s880_s5, %s880_s5 }
  0x46   :  { %1056 = vmatpush3.bf16.msra.mxu1 %v1147_v9  ;;  %p1170_p0 = scmp.ne.s32.totalorder %s880_s5, %s1169_s6  ;;  %p1175_p2 = scmp.lt.s32.totalorder %s1169_s6, %s1169_s6 }
  0x47   :  { %1057 = vmatprep.subr.bf16.mxu1 %v1193_v43 }
  0x48   :  { %1074 = vmatpush3.bf16.msra.mxu0 %v1154_v16  ;;  %p1176_p3 = por %p1175_p2, %p1174_p1 }
  0x49   :  { %1075 = vmatprep.subr.bf16.mxu0 %v1193_v43 }
  0x4a   :  { %1058 = vmatpush3.bf16.msra.mxu1 %v1148_v10  ;;  %p1177_p4 = pnand %p1176_p3, %p1170_p0 }
  0x4b   :  { %1059 = vmatprep.subr.bf16.mxu1 %v1193_v43 }
  0x4c   :  { %1076 = vmatpush3.bf16.msra.mxu0 %v1155_v17 }
  0x4d   :  { %1077 = vmatprep.subr.bf16.mxu0 %v1193_v43 }
  0x4e   :  { %1060 = vmatpush3.bf16.msra.mxu1 %v1149_v11 }
  0x4f   :  { %1061 = vmatprep.subr.bf16.mxu1 %v1193_v43 }
  0x50   :  { %1078 = vmatpush3.bf16.msra.mxu0 %v1156_v18 }
  0x51   :  { %1079 = vmatprep.subr.bf16.mxu0 %v1193_v43 }
  0x52   :  { %1062 = vmatpush3.bf16.msra.mxu1 %v1150_v12 }
  0x53   :  { %1063 = vmatprep.subr.bf16.mxu1 %v1193_v43 }
  0x54   :  { %1080 = vmatpush3.bf16.msra.mxu0 %v1157_v19 }
  0x55   :  { %1081 = vmatprep.subr.bf16.mxu0 %v1193_v43 }
  0x56   :  { %1064 = vmatpush3.bf16.msra.mxu1 %v1151_v13 }
  0x57   :  { %1065 = vmatprep.subr.bf16.mxu1 %v1193_v43 }
  0x58   :  { %1082 = vmatpush3.bf16.msra.mxu0 %v1158_v20 }
  0x59   :  { %1083 = vmatprep.subr.bf16.mxu0 %v1193_v43 }
  0x5a   :  { %1066 = vmatpush3.bf16.msra.mxu1 %v1152_v14 }
  0x5c   :  { %1084 = vmatpush3.bf16.msra.mxu0 %v1159_v56 }
  0x5d   :  { %1085 = vmatprep.subr.bf16.mxu0 %v1193_v43  ;;  %v846_v43 = vlaneseq }
  0x5f   :  { %v847_v4 = vand.u32 127, %v846_v43 }
  0x60   :  { %1086 = vmatpush3.bf16.msra.mxu0 %v1160_v57 }
  0x61   :  { %vm848_vm2 = vcmp.lt.s32.totalorder %v847_v4, 10 }
  0xf5   :  { %v975_v21 = vpop.f32.mrb[0].mxu0 }
  0xf6   :  { %v976_v23 = vpop.f32.mrb[1].mxu0 }
  0xf7   :  { %v977_v24 = vadd.f32 %v976_v23, %v975_v21  ;;  %v978_v25 = vpop.f32.mrb[2].mxu0  ;;  %v997_v26 = vpop.f32.mrb[0].mxu1 }
  0xf8   :  { %v979_v27 = vpop.f32.mrb[3].mxu0  ;;  %v998_v30 = vpop.f32.mrb[1].mxu1 }
  0xf9   :  { %v487_v28 = vadd.f32 %v977_v24, %v890_v22  ;;  %v980_v29 = vadd.f32 %v979_v27, %v978_v25  ;;  %v999_v31 = vadd.f32 %v998_v30, %v997_v26  ;;  %v1000_v32 = vpop.f32.mrb[2].mxu1 }
  0xfa   :  { %v1001_v34 = vpop.f32.mrb[3].mxu1 }
  0xfb   :  { %v490_v33 = vadd.f32 %v980_v29, %v890_v22  ;;  %v528_v35 = vadd.f32 %v999_v31, %v487_v28  ;;  %v1002_v36 = vadd.f32 %v1001_v34, %v1000_v32 }
  0xfd   :  { %v531_v37 = vadd.f32 %v1002_v36, %v490_v33 }
  0xff   :  { %v609_v38 = vpop.f32.mrb[4].mxu1 }
 0x100   :  { %v1049_v39 = vpop.f32.mrb[5].mxu1 }
 0x101   :  { %v612_v40 = vpop.f32.mrb[6].mxu1 }
 0x102   :  { %v1050_v41 = vpop.f32.mrb[7].mxu1 }
 0x115   :  { %v1019_v42 = vpop.f32.mrb[4].mxu0 }
 0x116   :  { %v1020_v44 = vpop.f32.mrb[5].mxu0 }
 0x117   :  { %v1021_v45 = vadd.f32 %v1020_v44, %v1019_v42  ;;  %v1022_v46 = vpop.f32.mrb[6].mxu0 }
 0x118   :  { %v1023_v47 = vpop.f32.mrb[7].mxu0 }
 0x119   :  { %v569_v48 = vadd.f32 %v1021_v45, %v528_v35  ;;  %v1024_v49 = vadd.f32 %v1023_v47, %v1022_v46 }
 0x11b   :  { %v610_v50 = vadd.f32 %v609_v38, %v569_v48  ;;  %v572_v51 = vadd.f32 %v1024_v49, %v531_v37 }
 0x11d   :  { %v613_v52 = vadd.f32 %v612_v40, %v572_v51  ;;  %v616_v53 = vmax.f32 %v610_v50, 0.0 }
 0x11f   :  { %v617_v54 = vmax.f32 %v613_v52, 0.0 }
 0x121   :  { %v618_v55 = vpack.c.bf16 %v617_v54, %v616_v53 }
 0x123   :  { %1068 = vmatmul.mubr.bf16.vlgmr.msra.gmra.mrb[8].mxu1 %v618_v55 }
 0x1f6   :  { %v724_v59 = vpop.f32.mrb[8].mxu1 }
 0x1f7   :  { %v725_v60 = vadd.f32 %v941_v58, %v724_v59  ;;  %v1069_v61 = vpop.f32.mrb[9].mxu1 }
 0x1f8   :  { %v727_v62 = vpop.f32.mrb[10].mxu1 }
 0x1f9   :  { %v728_v63 = vadd.f32 %v941_v58, %v727_v62  ;;  %v1070_v0 = vpop.f32.mrb[11].mxu1  ;;  %v731_v1 = vmax.f32 %v725_v60, 0.0 }
 0x1fb   :  { %v732_v2 = vmax.f32 %v728_v63, 0.0 }
 0x1fd   :  { %v733_v3 = vpack.c.bf16 %v732_v2, %v731_v1 }
 0x1ff   :  { %1088 = vmatmul.mubr.bf16.vlgmr.msra.gmra.mrb[8].mxu0 %v733_v3 }
 0x2d2   :  { %v839_v6 = vpop.f32.mrb[8].mxu0 }
 0x2d3   :  { %v840_v7 = vadd.f32 %v950_v5, %v839_v6  ;;  %v1089_v8 = vpop.f32.mrb[9].mxu0 }
 0x2d4   :  { %v842_v9 = vpop.f32.mrb[10].mxu0 }
 0x2d5   :  { %v843_v10 = vadd.f32 %v950_v5, %v842_v9  ;;  %v1090_v11 = vpop.f32.mrb[11].mxu0  ;;  %v849_v12 = vsel %vm848_vm2, %v840_v7, -1e+30 }
 0x2d6   :  { %851 = vmax.xlane.f32.xlu0 %v849_v12 }
 0x2d7   :  { %v850_v13 = vsel %vm848_vm2, %v843_v10, -1e+30 }
 0x2da   :  { %853 = vmax.xlane.f32.xlu0 %v850_v13 }
 0x363   :  { %v852_v14 = vpop.xlane.xlu0 %851 }
 0x364   :  { %v855_v15 = vsub.f32 %v849_v12, %v852_v14 }
 0x366   :  { %v857_v16 = vmul.f32 1.442695, %v855_v15 }
 0x367   :  { %v854_v17 = vpop.xlane.xlu0 %853 }
 0x368   :  { %v856_v18 = vsub.f32 %v850_v13, %v854_v17  ;;  %1161 = vpow2.f32 %v857_v16 }
 0x36a   :  { %v859_v19 = vmul.f32 1.442695, %v856_v18 }
 0x36c   :  { %1163 = vpow2.f32 %v859_v19 }
 0x372   :  { %v1162_v20 = vpop.eup %1161 }
 0x373   :  { %861 = vadd.xlane.f32.xlu1 %v1162_v20 }
 0x376   :  { %v1164_v21 = vpop.eup %1163 }
 0x377   :  { %863 = vadd.xlane.f32.xlu1 %v1164_v21 }
 0x400   :  { %v862_v22 = vpop.xlane.xlu1 %861 }
 0x401   :  { %1165 = vlog2.f32 %v862_v22 }
 0x404   :  { %v864_v23 = vpop.xlane.xlu1 %863 }
 0x405   :  { %1167 = vlog2.f32 %v864_v23 }
 0x40b   :  { %v1166_v24 = vpop.eup %1165 }
 0x40c   :  { %v866_v25 = vmul.f32 0.6931472, %v1166_v24 }
 0x40e   :  { %v869_v26 = vsub.f32 %v855_v15, %v866_v25 }
 0x40f   :  { %v1168_v27 = vpop.eup %1167 }
 0x410   :  { %872 = vst.msk [vmem:[#allocation2] sm:$0xff] %vm871_vm3, %v869_v26  ;;  %v868_v28 = vmul.f32 0.6931472, %v1168_v27 }
 0x412   :  { %v870_v29 = vsub.f32 %v856_v18, %v868_v28 }
 0x414   :  { %873 = vst.msk [vmem:[#allocation2 + $0x8] sm:$0xff] %vm871_vm3, %v870_v29 }
 0x415   :  { %1180 = shalt.err (!%p1177_p4)
}
 0x416   :  { %s1181_s23 = scalar_lea.hbm %s1526_s7, 256 }
 0x417   :  { %p1182_p5 = scmp.ne.s32.totalorder %s1526_s7, %s1181_s23  ;;  %p1185_p6 = scmp.lt.u32.totalorder %s1181_s23, %s1526_s7 }
 0x419   :  { %p1187_p7 = pnand %p1185_p6, %p1182_p5 }
 0x41b   :  { %1190 = shalt.err (!%p1187_p7)
}
 0x41c   :  { %s1196_s28 = smov 128   ;;  %s1197_s29 = smov 8  }
 0x41d   :  { %885 = dma.vmem_to_hbm [thread:$0]  %s880_s5, 256, %s1526_s7, [#allocation3], %s1196_s28, %s1196_s28, %s1197_s29  }
 0x41e   :  { %1191 = dma.done.wait [#allocation3], 256  }
 0x41f   :  { %1192 = vsyncadd [#allocation3], 4294967040 }
 0x420   :  { %889 = vsyncpa [#allocation3], 1 }

</bundles_post_ra>
